<compile_context>
chip_gen: v7x
topology: tpu7x:2x2x1
jax: 0.10.0
libtpu: 0.0.40
codegen_flags: <defaults>
</compile_context>

<pallas_src>
import functools

import jax
import jax.numpy as jnp
from jax.experimental import pallas as pl
from jax.experimental.pallas import tpu as pltpu

LANE = 128


def _ru(n, m):
    return ((n + m - 1) // m) * m


def _pad_2d(a, rows, cols):
    out = jnp.zeros((rows, cols), a.dtype)
    return out.at[: a.shape[0], : a.shape[1]].set(a)


def _choose_tile(B, max_tile=512, min_steps=2):
    """Batch tile: cap at max_tile rows, keep >= min_steps grid steps when
    possible so the 'parallel' batch axis can shard across TensorCores."""
    b8 = _ru(B, 8)
    tile = min(b8, max_tile)
    if b8 > 8:
        tile = min(tile, _ru(-(-b8 // min_steps), 8))
    B_pad = _ru(b8, tile)
    return tile, B_pad


# --------------------------------------------------------------------------
# Fused Pallas kernel
# --------------------------------------------------------------------------
def _fused_dcn_kernel(*refs, n_hidden, layer_num, low_rank, er, erp, hlp):
    """One batch tile of the full DCN_V2 forward.

    Ref order:
      slab [TB, Sp]  (X in lanes [0,nf), dnn_input in lanes [nf, nf+D)),
      [joint block-diag W (bf16), joint b (f32)] * n_hidden,
      lwf [1, Hp_last], lbf [1, 1],
      GV [L, Sp, 2*ERp] (bf16), C_bd [L, ERp, ERp] (bf16),
      U_slab [L, ERp, Sp] (bf16), cross_bias [L, 1, Sp],
      wc_row [1, Sp], wd_row [1, Hp_last],
      out [TB, 1]
    """
    it = iter(refs)
    slab_ref = next(it)
    joint_wb = [next(it) for _ in range(2 * n_hidden)]
    lwf_ref = next(it)
    lbf_ref = next(it)
    gv_ref = next(it)
    c_ref = next(it)
    u_ref = next(it)
    cb_ref = next(it)
    wc_ref = next(it)
    wd_ref = next(it)
    out_ref = next(it)

    f32 = jnp.float32
    bf16 = jnp.bfloat16

    x_in = slab_ref[...]                                  # [TB, Sp] f32

    # ---- (1)+(2) logit-MLP and deep-DNN hidden stacks fused into one
    #      block-diagonal matmul per layer (fills the 256-wide MXU).
    #      ReLU after every layer on both halves (matches the reference).
    a = x_in
    for k in range(n_hidden):
        w = joint_wb[2 * k][...]                          # bf16 [rows, 2*Hkp]
        b = joint_wb[2 * k + 1][...]                      # f32  [1, 2*Hkp]
        a = jnp.maximum(
            jnp.dot(a.astype(bf16), w, preferred_element_type=f32) + b, 0.0)
    h_logit = a[:, :hlp]
    h_deep = a[:, hlp:]

    # final 1-unit logit layer as VPU multiply + lane reduce, with the
    # reference's trailing ReLU; deep-facing half of dnn_linear likewise.
    logit = jnp.maximum(
        jnp.sum(h_logit * lwf_ref[...], axis=-1, keepdims=True) + lbf_ref[...],
        0.0)
    deep_out = jnp.sum(h_deep * wd_ref[...], axis=-1, keepdims=True)

    # ---- (3) CrossNetMix: per layer one [Sp, 2*ERp] matmul (gating || V),
    #      one block-diagonal C matmul, one stacked-U matmul.
    x0 = x_in
    x1 = x_in
    tb = x_in.shape[0]
    if erp != er:
        lane = jax.lax.broadcasted_iota(jnp.int32, (tb, erp), 1)
        lane_mask = (lane < er).astype(f32)               # hoisted out of loop
    for i in range(layer_num):
        sv = jnp.dot(x1.astype(bf16), gv_ref[i], preferred_element_type=f32)
        s = sv[:, :erp]                  # gating scores, lane-replicated R x
        h1 = jnp.tanh(sv[:, erp:])       # tanh(V_e^T x1), experts stacked
        s = s - jnp.max(s, axis=-1, keepdims=True)
        es = jnp.exp(s)
        if erp != er:
            es = es * lane_mask
        denom = jnp.sum(es, axis=-1, keepdims=True)       # = R * sum_e exp
        probs_rep = es * (float(low_rank) / denom)        # exact softmax

        h2 = jnp.tanh(jnp.dot(h1.astype(bf16), c_ref[i],
                              preferred_element_type=f32))
        h2 = h2 * probs_rep
        delta = jnp.dot(h2.astype(bf16), u_ref[i],
                        preferred_element_type=f32) + cb_ref[i]
        x1 = x1 + x0 * delta             # reference form: Hadamard with x_0
    cross = x1

    # ---- (4) final linear (out dim 1) as VPU reduce + sigmoid
    z = (logit
         + jnp.sum(cross * wc_ref[...], axis=-1, keepdims=True)
         + deep_out)
    out_ref[...] = jax.nn.sigmoid(z)                      # [TB, 1]


# --------------------------------------------------------------------------
# Parameter setup (deterministic, synthetic — mirrors the module's __init__)
# --------------------------------------------------------------------------
def init_params(key, *, num_feats, sparse_vocab, n_dense, emb_size,
                dnn_hidden, low_rank, num_experts, layer_num, init_std=1e-4):
    D = n_dense + emb_size * len(sparse_vocab)   # inputs_dim
    ks = iter(jax.random.split(key, 64))
    p = {}

    # DCN_V2.linear logit MLP: dims = [num_feats] + hidden + [1]
    dims = [num_feats] + list(dnn_hidden) + [1]
    p['lin_w'] = [init_std * jax.random.normal(next(ks), (dims[i], dims[i + 1]),
                                               jnp.float32)
                  for i in range(len(dims) - 1)]
    p['lin_b'] = [jnp.zeros((dims[i + 1],), jnp.float32)
                  for i in range(len(dims) - 1)]

    # sparse embedding tables
    p['emb'] = [jax.random.normal(next(ks), (v, emb_size), jnp.float32)
                for v in sparse_vocab]

    # deep DNN: dims = [D] + hidden
    ddims = [D] + list(dnn_hidden)
    p['dnn_w'] = [init_std * jax.random.normal(next(ks),
                                               (ddims[i], ddims[i + 1]),
                                               jnp.float32)
                  for i in range(len(ddims) - 1)]
    p['dnn_b'] = [jnp.zeros((ddims[i + 1],), jnp.float32)
                  for i in range(len(ddims) - 1)]

    # CrossNetMix params
    p['V'] = jax.random.normal(next(ks),
                               (layer_num, num_experts, D, low_rank),
                               jnp.float32)
    p['C'] = jax.random.normal(next(ks),
                               (layer_num, num_experts, low_rank, low_rank),
                               jnp.float32)
    p['U'] = jax.random.normal(next(ks),
                               (layer_num, num_experts, D, low_rank),
                               jnp.float32)
    p['G'] = 0.1 * jax.random.normal(next(ks), (D, num_experts), jnp.float32)
    p['cross_bias'] = jnp.zeros((layer_num, 1, D), jnp.float32)

    # dnn_linear: [D + hidden[-1], 1], no bias
    p['w_final'] = init_std * jax.random.normal(next(ks),
                                                (D + dnn_hidden[-1], 1),
                                                jnp.float32)
    p['D'] = D
    return p


def pack_params(p, *, num_feats, dnn_hidden, low_rank, num_experts):
    """Repack all weights to lane-dense, MXU-friendly (bf16, 256-wide) shapes.

    The activation slab holds the raw features X in lanes [0, num_feats) and
    the assembled dnn_input in lanes [num_feats, num_feats+D); every weight
    row that consumes dnn_input is shifted by num_feats accordingly.
    """
    D = p['D']
    Sp = _ru(num_feats + D, LANE)
    ER = num_experts * low_rank
    ERp = _ru(ER, LANE)
    Hs = [_ru(h, LANE) for h in dnn_hidden]
    bf16 = jnp.bfloat16

    pk = {'Sp': Sp, 'ER': ER, 'ERp': ERp, 'Hs': Hs, 'nf': num_feats}

    # fused logit/deep hidden layers: block-diagonal [*, 2*Hkp] weights (bf16)
    joint_wb = []
    for k in range(len(dnn_hidden)):
        h_out = dnn_hidden[k]
        hp_out = Hs[k]
        if k == 0:
            w = jnp.zeros((Sp, 2 * hp_out), jnp.float32)
            w = w.at[:num_feats, :h_out].set(p['lin_w'][0])
            w = w.at[num_feats:num_feats + D,
                     hp_out:hp_out + h_out].set(p['dnn_w'][0])
        else:
            h_in = dnn_hidden[k - 1]
            hp_in = Hs[k - 1]
            w = jnp.zeros((2 * hp_in, 2 * hp_out), jnp.float32)
            w = w.at[:h_in, :h_out].set(p['lin_w'][k])
            w = w.at[hp_in:hp_in + h_in,
                     hp_out:hp_out + h_out].set(p['dnn_w'][k])
        b = jnp.zeros((1, 2 * hp_out), jnp.float32)
        b = b.at[0, :h_out].set(p['lin_b'][k])
        b = b.at[0, hp_out:hp_out + h_out].set(p['dnn_b'][k])
        joint_wb += [w.astype(bf16), b]
    pk['joint_wb'] = joint_wb

    # final 1-unit logit layer + final dnn_linear rows (VPU reduce, keep f32)
    pk['lwf'] = _pad_2d(p['lin_w'][-1].T, 1, Hs[-1])          # [1, Hp_last]
    pk['lbf'] = p['lin_b'][-1].reshape(1, 1)                  # [1, 1]
    pk['wd_row'] = jnp.zeros((1, Hs[-1]), jnp.float32) \
        .at[0, :dnn_hidden[-1]].set(p['w_final'][D:, 0])
    pk['wc_row'] = jnp.zeros((1, Sp), jnp.float32) \
        .at[0, num_feats:num_feats + D].set(p['w_final'][:D, 0])

    # CrossNetMix: fused [Sp, 2*ERp] gating||V weight per layer (bf16),
    # block-diagonal C (bf16), stacked U^T (bf16), bias in slab layout (f32).
    L, E, Dd, R = p['V'].shape
    g_rep = jnp.repeat(p['G'], R, axis=1)                     # [D, E*R]
    v_stack = jnp.transpose(p['V'], (0, 2, 1, 3)).reshape(L, Dd, E * R)
    gv = jnp.zeros((L, Sp, 2 * ERp), jnp.float32)
    gv = gv.at[:, num_feats:num_feats + Dd, :E * R].set(
        jnp.broadcast_to(g_rep[None], (L, Dd, E * R)))
    gv = gv.at[:, num_feats:num_feats + Dd, ERp:ERp + E * R].set(v_stack)
    pk['GV'] = gv.astype(bf16)

    c_bd = jnp.zeros((L, ERp, ERp), jnp.float32)
    for e in range(E):
        c_bd = c_bd.at[:, e * R:(e + 1) * R, e * R:(e + 1) * R].set(p['C'][:, e])
    pk['C_bd'] = c_bd.astype(bf16)
    # TODO(synk): keep ERp <= 256 (or group experts) so the block-diag C
    # matmul does not scale MXU cycles on zeros at production expert counts.

    u_stack = jnp.transpose(p['U'], (0, 1, 3, 2)).reshape(L, E * R, Dd)
    u_slab = jnp.zeros((L, ERp, Sp), jnp.float32)
    u_slab = u_slab.at[:, :E * R, num_feats:num_feats + Dd].set(u_stack)
    pk['U_slab'] = u_slab.astype(bf16)

    cb = jnp.zeros((L, 1, Sp), jnp.float32)
    cb = cb.at[:, :, num_feats:num_feats + Dd].set(p['cross_bias'])
    pk['cross_bias'] = cb
    return pk


# --------------------------------------------------------------------------
# Full DCN_V2 forward
# --------------------------------------------------------------------------
def dcn_v2_forward(X, p, pk, sparse_cols, dense_cols, *, layer_num,
                   num_experts, low_rank):
    B = X.shape[0]
    nf = X.shape[1]

    # Embedding lookups + dense assembly stay in XLA glue (tiny tables).
    # TODO(synk): for large vocabularies, move the gather into the kernel via
    # PrefetchScalarGridSpec so dnn_input never round-trips HBM.
    embs = [jnp.take(tbl, X[:, c].astype(jnp.int32), axis=0)
            for tbl, c in zip(p['emb'], sparse_cols)]
    dense = [X[:, c].reshape(B, 1) for c in dense_cols]
    dnn_input = jnp.concatenate(dense + embs, axis=1)                 # [B, D]

    Sp = pk['Sp']
    tile_b, B_pad = _choose_tile(B)

    # single lane-dense activation slab: [ X | dnn_input | zero padding ]
    slab = jnp.zeros((B_pad, Sp), jnp.float32)
    slab = slab.at[:B, :nf].set(X)
    slab = slab.at[:B, nf:nf + dnn_input.shape[1]].set(dnn_input)

    n_hidden = len(pk['joint_wb']) // 2

    args = ([slab] + pk['joint_wb']
            + [pk['lwf'], pk['lbf'], pk['GV'], pk['C_bd'], pk['U_slab'],
               pk['cross_bias'], pk['wc_row'], pk['wd_row']])

    act_specs = [pl.BlockSpec((tile_b, Sp), lambda b: (b, 0))]
    # weights: full-array blocks, constant index_map => DMA'd once, resident
    w_specs = [pl.BlockSpec(a.shape, (lambda b, nd=a.ndim: (0,) * nd))
               for a in args[1:]]

    kern = functools.partial(_fused_dcn_kernel,
                             n_hidden=n_hidden, layer_num=layer_num,
                             low_rank=low_rank, er=pk['ER'], erp=pk['ERp'],
                             hlp=pk['Hs'][-1])

    out = pl.pallas_call(
        kern,
        out_shape=jax.ShapeDtypeStruct((B_pad, 1), jnp.float32),
        grid=(B_pad // tile_b,),
        in_specs=act_specs + w_specs,
        out_specs=pl.BlockSpec((tile_b, 1), lambda b: (b, 0)),
        compiler_params=pltpu.CompilerParams(
            dimension_semantics=("parallel",)),
    )(*args)

    return out[:B]                                                    # [B, 1]


# --------------------------------------------------------------------------
if __name__ == "__main__":
    B = 8
    emb_size = 4
    sparse_vocab = [10, 12]        # feature columns 0, 1 are sparse ids
    n_dense = 2                    # feature columns 2, 3 are dense floats
    num_feats = len(sparse_vocab) + n_dense
    dnn_hidden = (32, 32)
    low_rank, num_experts, layer_num = 32, 4, 2

    key = jax.random.PRNGKey(0)
    k_param, k_sp0, k_sp1, k_dn = jax.random.split(key, 4)
    params = init_params(k_param,
                         num_feats=num_feats, sparse_vocab=sparse_vocab,
                         n_dense=n_dense, emb_size=emb_size,
                         dnn_hidden=dnn_hidden, low_rank=low_rank,
                         num_experts=num_experts, layer_num=layer_num)
    packed = pack_params(params, num_feats=num_feats, dnn_hidden=dnn_hidden,
                         low_rank=low_rank, num_experts=num_experts)

    sp0 = jax.random.randint(k_sp0, (B, 1), 0, sparse_vocab[0])
    sp1 = jax.random.randint(k_sp1, (B, 1), 0, sparse_vocab[1])
    dense_vals = jax.random.normal(k_dn, (B, n_dense), jnp.float32)
    X = jnp.concatenate(
        [sp0.astype(jnp.float32), sp1.astype(jnp.float32), dense_vals],
        axis=1)                                                       # [B, 4]

    sparse_cols = [0, 1]
    dense_cols = [2, 3]

    y_pred = dcn_v2_forward(X, params, packed, sparse_cols, dense_cols,
                            layer_num=layer_num, num_experts=num_experts,
                            low_rank=low_rank)
    y_pred = jax.block_until_ready(y_pred)
    assert y_pred.shape == (B, 1)
    assert bool(jnp.all(jnp.isfinite(y_pred)))
    print("KERNEL_OK")
</pallas_src>

<mosaic_0001>
module attributes {stable_mosaic.version = 11 : i64} {
  func.func @_fused_dcn_kernel(%arg0: i32, %arg1: memref<8x128xf32, #tpu.memory_space<vmem>>, %arg2: memref<128x256xbf16, #tpu.memory_space<vmem>>, %arg3: memref<1x256xf32, #tpu.memory_space<vmem>>, %arg4: memref<256x256xbf16, #tpu.memory_space<vmem>>, %arg5: memref<1x256xf32, #tpu.memory_space<vmem>>, %arg6: memref<1x128xf32, #tpu.memory_space<vmem>>, %arg7: memref<1x1xf32, #tpu.memory_space<vmem>>, %arg8: memref<2x128x256xbf16, #tpu.memory_space<vmem>>, %arg9: memref<2x128x128xbf16, #tpu.memory_space<vmem>>, %arg10: memref<2x128x128xbf16, #tpu.memory_space<vmem>>, %arg11: memref<2x1x128xf32, #tpu.memory_space<vmem>>, %arg12: memref<1x128xf32, #tpu.memory_space<vmem>>, %arg13: memref<1x128xf32, #tpu.memory_space<vmem>>, %arg14: memref<8x1xf32, #tpu.memory_space<vmem>>) attributes {dimension_semantics = [#tpu.dimension_semantics<parallel>], iteration_bounds = array<i64: 1>, scalar_prefetch = 0 : i64, scratch_operands = 0 : i64, tpu.core_type = #tpu.core_type<tc>, window_params = [{transform_indices = @transform_0, window_bounds = array<i64: 8, 128>}, {pipeline_mode = #tpu.pipeline_mode<synchronous>, transform_indices = @transform_1, window_bounds = array<i64: 128, 256>}, {pipeline_mode = #tpu.pipeline_mode<synchronous>, transform_indices = @transform_2, window_bounds = array<i64: 1, 256>}, {pipeline_mode = #tpu.pipeline_mode<synchronous>, transform_indices = @transform_3, window_bounds = array<i64: 256, 256>}, {pipeline_mode = #tpu.pipeline_mode<synchronous>, transform_indices = @transform_4, window_bounds = array<i64: 1, 256>}, {pipeline_mode = #tpu.pipeline_mode<synchronous>, transform_indices = @transform_5, window_bounds = array<i64: 1, 128>}, {pipeline_mode = #tpu.pipeline_mode<synchronous>, transform_indices = @transform_6, window_bounds = array<i64: 1, 1>}, {pipeline_mode = #tpu.pipeline_mode<synchronous>, transform_indices = @transform_7, window_bounds = array<i64: 2, 128, 256>}, {pipeline_mode = #tpu.pipeline_mode<synchronous>, transform_indices = @transform_8, window_bounds = array<i64: 2, 128, 128>}, {pipeline_mode = #tpu.pipeline_mode<synchronous>, transform_indices = @transform_9, window_bounds = array<i64: 2, 128, 128>}, {pipeline_mode = #tpu.pipeline_mode<synchronous>, transform_indices = @transform_10, window_bounds = array<i64: 2, 1, 128>}, {pipeline_mode = #tpu.pipeline_mode<synchronous>, transform_indices = @transform_11, window_bounds = array<i64: 1, 128>}, {pipeline_mode = #tpu.pipeline_mode<synchronous>, transform_indices = @transform_12, window_bounds = array<i64: 1, 128>}, {transform_indices = @transform_13, window_bounds = array<i64: 8, 1>}]} {
    %c0 = arith.constant 0 : index
    %c0_0 = arith.constant 0 : index
    %0 = vector.load %arg1[%c0, %c0_0] : memref<8x128xf32, #tpu.memory_space<vmem>>, vector<8x128xf32>
    %c0_1 = arith.constant 0 : index
    %c0_2 = arith.constant 0 : index
    %1 = vector.load %arg2[%c0_1, %c0_2] : memref<128x256xbf16, #tpu.memory_space<vmem>>, vector<128x256xbf16>
    %c0_3 = arith.constant 0 : index
    %c0_4 = arith.constant 0 : index
    %2 = vector.load %arg3[%c0_3, %c0_4] : memref<1x256xf32, #tpu.memory_space<vmem>>, vector<1x256xf32>
    %3 = arith.truncf %0 : vector<8x128xf32> to vector<8x128xbf16>
    %cst = arith.constant dense<0.000000e+00> : vector<8x256xf32>
    %4 = tpu.matmul %3, %1, %cst {dimension_numbers = #tpu.dot_dimension_numbers<[1], [0], [0], [1], [0, 0, 1, 1], [], []>} : vector<8x128xbf16>, vector<128x256xbf16>, vector<8x256xf32> -> vector<8x256xf32>
    %5 = vector.broadcast %2 : vector<1x256xf32> to vector<8x256xf32>
    %6 = arith.addf %4, %5 : vector<8x256xf32>
    %cst_5 = arith.constant 0.000000e+00 : f32
    %7 = vector.broadcast %cst_5 : f32 to vector<8x256xf32>
    %8 = arith.maximumf %6, %7 : vector<8x256xf32>
    %c0_6 = arith.constant 0 : index
    %c0_7 = arith.constant 0 : index
    %9 = vector.load %arg4[%c0_6, %c0_7] : memref<256x256xbf16, #tpu.memory_space<vmem>>, vector<256x256xbf16>
    %c0_8 = arith.constant 0 : index
    %c0_9 = arith.constant 0 : index
    %10 = vector.load %arg5[%c0_8, %c0_9] : memref<1x256xf32, #tpu.memory_space<vmem>>, vector<1x256xf32>
    %11 = arith.truncf %8 : vector<8x256xf32> to vector<8x256xbf16>
    %cst_10 = arith.constant dense<0.000000e+00> : vector<8x256xf32>
    %12 = tpu.matmul %11, %9, %cst_10 {dimension_numbers = #tpu.dot_dimension_numbers<[1], [0], [0], [1], [0, 0, 1, 1], [], []>} : vector<8x256xbf16>, vector<256x256xbf16>, vector<8x256xf32> -> vector<8x256xf32>
    %13 = vector.broadcast %10 : vector<1x256xf32> to vector<8x256xf32>
    %14 = arith.addf %12, %13 : vector<8x256xf32>
    %cst_11 = arith.constant 0.000000e+00 : f32
    %15 = vector.broadcast %cst_11 : f32 to vector<8x256xf32>
    %16 = arith.maximumf %14, %15 : vector<8x256xf32>
    %17 = vector.extract_strided_slice %16 {offsets = [0, 0], sizes = [8, 128], strides = [1, 1]} : vector<8x256xf32> to vector<8x128xf32>
    %18 = vector.extract_strided_slice %16 {offsets = [0, 128], sizes = [8, 128], strides = [1, 1]} : vector<8x256xf32> to vector<8x128xf32>
    %c0_12 = arith.constant 0 : index
    %c0_13 = arith.constant 0 : index
    %19 = vector.load %arg6[%c0_12, %c0_13] : memref<1x128xf32, #tpu.memory_space<vmem>>, vector<1x128xf32>
    %20 = vector.broadcast %19 : vector<1x128xf32> to vector<8x128xf32>
    %21 = arith.mulf %17, %20 : vector<8x128xf32>
    %cst_14 = arith.constant dense<0.000000e+00> : vector<8xf32>
    %22 = vector.multi_reduction <add>, %21, %cst_14 [1] : vector<8x128xf32> to vector<8xf32>
    %23 = vector.shape_cast %22 : vector<8xf32> to vector<8x1xf32>
    %c0_15 = arith.constant 0 : index
    %c0_16 = arith.constant 0 : index
    %24 = vector.load %arg7[%c0_15, %c0_16] : memref<1x1xf32, #tpu.memory_space<vmem>>, vector<1x1xf32>
    %25 = vector.broadcast %24 : vector<1x1xf32> to vector<8x1xf32>
    %26 = arith.addf %23, %25 : vector<8x1xf32>
    %cst_17 = arith.constant 0.000000e+00 : f32
    %27 = vector.broadcast %cst_17 : f32 to vector<8x1xf32>
    %28 = arith.maximumf %26, %27 : vector<8x1xf32>
    %c0_18 = arith.constant 0 : index
    %c0_19 = arith.constant 0 : index
    %29 = vector.load %arg13[%c0_18, %c0_19] : memref<1x128xf32, #tpu.memory_space<vmem>>, vector<1x128xf32>
    %30 = vector.broadcast %29 : vector<1x128xf32> to vector<8x128xf32>
    %31 = arith.mulf %18, %30 : vector<8x128xf32>
    %cst_20 = arith.constant dense<0.000000e+00> : vector<8xf32>
    %32 = vector.multi_reduction <add>, %31, %cst_20 [1] : vector<8x128xf32> to vector<8xf32>
    %33 = vector.shape_cast %32 : vector<8xf32> to vector<8x1xf32>
    %34 = arith.truncf %0 : vector<8x128xf32> to vector<8x128xbf16>
    %c0_21 = arith.constant 0 : index
    %c0_22 = arith.constant 0 : index
    %c0_23 = arith.constant 0 : index
    %35 = vector.load %arg8[%c0_21, %c0_22, %c0_23] : memref<2x128x256xbf16, #tpu.memory_space<vmem>>, vector<1x128x256xbf16>
    %36 = vector.shape_cast %35 : vector<1x128x256xbf16> to vector<128x256xbf16>
    %cst_24 = arith.constant dense<0.000000e+00> : vector<8x256xf32>
    %37 = tpu.matmul %34, %36, %cst_24 {dimension_numbers = #tpu.dot_dimension_numbers<[1], [0], [0], [1], [0, 0, 1, 1], [], []>} : vector<8x128xbf16>, vector<128x256xbf16>, vector<8x256xf32> -> vector<8x256xf32>
    %38 = vector.extract_strided_slice %37 {offsets = [0, 0], sizes = [8, 128], strides = [1, 1]} : vector<8x256xf32> to vector<8x128xf32>
    %39 = vector.extract_strided_slice %37 {offsets = [0, 128], sizes = [8, 128], strides = [1, 1]} : vector<8x256xf32> to vector<8x128xf32>
    %40 = math.tanh %39 : vector<8x128xf32>
    %cst_25 = arith.constant dense<0xFF800000> : vector<8xf32>
    %41 = vector.multi_reduction <maximumf>, %38, %cst_25 [1] : vector<8x128xf32> to vector<8xf32>
    %42 = vector.shape_cast %41 : vector<8xf32> to vector<8x1xf32>
    %43 = vector.broadcast %42 : vector<8x1xf32> to vector<8x128xf32>
    %44 = arith.subf %38, %43 : vector<8x128xf32>
    %45 = math.exp %44 : vector<8x128xf32>
    %cst_26 = arith.constant dense<0.000000e+00> : vector<8xf32>
    %46 = vector.multi_reduction <add>, %45, %cst_26 [1] : vector<8x128xf32> to vector<8xf32>
    %47 = vector.shape_cast %46 : vector<8xf32> to vector<8x1xf32>
    %cst_27 = arith.constant 3.200000e+01 : f32
    %48 = vector.broadcast %cst_27 : f32 to vector<8x1xf32>
    %49 = arith.divf %48, %47 : vector<8x1xf32>
    %50 = vector.broadcast %49 : vector<8x1xf32> to vector<8x128xf32>
    %51 = arith.mulf %45, %50 : vector<8x128xf32>
    %52 = arith.truncf %40 : vector<8x128xf32> to vector<8x128xbf16>
    %c0_28 = arith.constant 0 : index
    %c0_29 = arith.constant 0 : index
    %c0_30 = arith.constant 0 : index
    %53 = vector.load %arg9[%c0_28, %c0_29, %c0_30] : memref<2x128x128xbf16, #tpu.memory_space<vmem>>, vector<1x128x128xbf16>
    %54 = vector.shape_cast %53 : vector<1x128x128xbf16> to vector<128x128xbf16>
    %cst_31 = arith.constant dense<0.000000e+00> : vector<8x128xf32>
    %55 = tpu.matmul %52, %54, %cst_31 {dimension_numbers = #tpu.dot_dimension_numbers<[1], [0], [0], [1], [0, 0, 1, 1], [], []>} : vector<8x128xbf16>, vector<128x128xbf16>, vector<8x128xf32> -> vector<8x128xf32>
    %56 = math.tanh %55 : vector<8x128xf32>
    %57 = arith.mulf %56, %51 : vector<8x128xf32>
    %58 = arith.truncf %57 : vector<8x128xf32> to vector<8x128xbf16>
    %c0_32 = arith.constant 0 : index
    %c0_33 = arith.constant 0 : index
    %c0_34 = arith.constant 0 : index
    %59 = vector.load %arg10[%c0_32, %c0_33, %c0_34] : memref<2x128x128xbf16, #tpu.memory_space<vmem>>, vector<1x128x128xbf16>
    %60 = vector.shape_cast %59 : vector<1x128x128xbf16> to vector<128x128xbf16>
    %cst_35 = arith.constant dense<0.000000e+00> : vector<8x128xf32>
    %61 = tpu.matmul %58, %60, %cst_35 {dimension_numbers = #tpu.dot_dimension_numbers<[1], [0], [0], [1], [0, 0, 1, 1], [], []>} : vector<8x128xbf16>, vector<128x128xbf16>, vector<8x128xf32> -> vector<8x128xf32>
    %c0_36 = arith.constant 0 : index
    %c0_37 = arith.constant 0 : index
    %c0_38 = arith.constant 0 : index
    %62 = vector.load %arg11[%c0_36, %c0_37, %c0_38] : memref<2x1x128xf32, #tpu.memory_space<vmem>>, vector<1x1x128xf32>
    %63 = vector.shape_cast %62 : vector<1x1x128xf32> to vector<1x128xf32>
    %64 = vector.broadcast %63 : vector<1x128xf32> to vector<8x128xf32>
    %65 = arith.addf %61, %64 : vector<8x128xf32>
    %66 = arith.mulf %0, %65 : vector<8x128xf32>
    %67 = arith.addf %0, %66 : vector<8x128xf32>
    %68 = arith.truncf %67 : vector<8x128xf32> to vector<8x128xbf16>
    %c1 = arith.constant 1 : index
    %c0_39 = arith.constant 0 : index
    %c0_40 = arith.constant 0 : index
    %69 = vector.load %arg8[%c1, %c0_39, %c0_40] : memref<2x128x256xbf16, #tpu.memory_space<vmem>>, vector<1x128x256xbf16>
    %70 = vector.shape_cast %69 : vector<1x128x256xbf16> to vector<128x256xbf16>
    %cst_41 = arith.constant dense<0.000000e+00> : vector<8x256xf32>
    %71 = tpu.matmul %68, %70, %cst_41 {dimension_numbers = #tpu.dot_dimension_numbers<[1], [0], [0], [1], [0, 0, 1, 1], [], []>} : vector<8x128xbf16>, vector<128x256xbf16>, vector<8x256xf32> -> vector<8x256xf32>
    %72 = vector.extract_strided_slice %71 {offsets = [0, 0], sizes = [8, 128], strides = [1, 1]} : vector<8x256xf32> to vector<8x128xf32>
    %73 = vector.extract_strided_slice %71 {offsets = [0, 128], sizes = [8, 128], strides = [1, 1]} : vector<8x256xf32> to vector<8x128xf32>
    %74 = math.tanh %73 : vector<8x128xf32>
    %cst_42 = arith.constant dense<0xFF800000> : vector<8xf32>
    %75 = vector.multi_reduction <maximumf>, %72, %cst_42 [1] : vector<8x128xf32> to vector<8xf32>
    %76 = vector.shape_cast %75 : vector<8xf32> to vector<8x1xf32>
    %77 = vector.broadcast %76 : vector<8x1xf32> to vector<8x128xf32>
    %78 = arith.subf %72, %77 : vector<8x128xf32>
    %79 = math.exp %78 : vector<8x128xf32>
    %cst_43 = arith.constant dense<0.000000e+00> : vector<8xf32>
    %80 = vector.multi_reduction <add>, %79, %cst_43 [1] : vector<8x128xf32> to vector<8xf32>
    %81 = vector.shape_cast %80 : vector<8xf32> to vector<8x1xf32>
    %cst_44 = arith.constant 3.200000e+01 : f32
    %82 = vector.broadcast %cst_44 : f32 to vector<8x1xf32>
    %83 = arith.divf %82, %81 : vector<8x1xf32>
    %84 = vector.broadcast %83 : vector<8x1xf32> to vector<8x128xf32>
    %85 = arith.mulf %79, %84 : vector<8x128xf32>
    %86 = arith.truncf %74 : vector<8x128xf32> to vector<8x128xbf16>
    %c1_45 = arith.constant 1 : index
    %c0_46 = arith.constant 0 : index
    %c0_47 = arith.constant 0 : index
    %87 = vector.load %arg9[%c1_45, %c0_46, %c0_47] : memref<2x128x128xbf16, #tpu.memory_space<vmem>>, vector<1x128x128xbf16>
    %88 = vector.shape_cast %87 : vector<1x128x128xbf16> to vector<128x128xbf16>
    %cst_48 = arith.constant dense<0.000000e+00> : vector<8x128xf32>
    %89 = tpu.matmul %86, %88, %cst_48 {dimension_numbers = #tpu.dot_dimension_numbers<[1], [0], [0], [1], [0, 0, 1, 1], [], []>} : vector<8x128xbf16>, vector<128x128xbf16>, vector<8x128xf32> -> vector<8x128xf32>
    %90 = math.tanh %89 : vector<8x128xf32>
    %91 = arith.mulf %90, %85 : vector<8x128xf32>
    %92 = arith.truncf %91 : vector<8x128xf32> to vector<8x128xbf16>
    %c1_49 = arith.constant 1 : index
    %c0_50 = arith.constant 0 : index
    %c0_51 = arith.constant 0 : index
    %93 = vector.load %arg10[%c1_49, %c0_50, %c0_51] : memref<2x128x128xbf16, #tpu.memory_space<vmem>>, vector<1x128x128xbf16>
    %94 = vector.shape_cast %93 : vector<1x128x128xbf16> to vector<128x128xbf16>
    %cst_52 = arith.constant dense<0.000000e+00> : vector<8x128xf32>
    %95 = tpu.matmul %92, %94, %cst_52 {dimension_numbers = #tpu.dot_dimension_numbers<[1], [0], [0], [1], [0, 0, 1, 1], [], []>} : vector<8x128xbf16>, vector<128x128xbf16>, vector<8x128xf32> -> vector<8x128xf32>
    %c1_53 = arith.constant 1 : index
    %c0_54 = arith.constant 0 : index
    %c0_55 = arith.constant 0 : index
    %96 = vector.load %arg11[%c1_53, %c0_54, %c0_55] : memref<2x1x128xf32, #tpu.memory_space<vmem>>, vector<1x1x128xf32>
    %97 = vector.shape_cast %96 : vector<1x1x128xf32> to vector<1x128xf32>
    %98 = vector.broadcast %97 : vector<1x128xf32> to vector<8x128xf32>
    %99 = arith.addf %95, %98 : vector<8x128xf32>
    %100 = arith.mulf %0, %99 : vector<8x128xf32>
    %101 = arith.addf %67, %100 : vector<8x128xf32>
    %c0_56 = arith.constant 0 : index
    %c0_57 = arith.constant 0 : index
    %102 = vector.load %arg12[%c0_56, %c0_57] : memref<1x128xf32, #tpu.memory_space<vmem>>, vector<1x128xf32>
    %103 = vector.broadcast %102 : vector<1x128xf32> to vector<8x128xf32>
    %104 = arith.mulf %101, %103 : vector<8x128xf32>
    %cst_58 = arith.constant dense<0.000000e+00> : vector<8xf32>
    %105 = vector.multi_reduction <add>, %104, %cst_58 [1] : vector<8x128xf32> to vector<8xf32>
    %106 = vector.shape_cast %105 : vector<8xf32> to vector<8x1xf32>
    %107 = arith.addf %28, %106 : vector<8x1xf32>
    %108 = arith.addf %107, %33 : vector<8x1xf32>
    %109 = arith.negf %108 : vector<8x1xf32>
    %110 = math.exp %109 : vector<8x1xf32>
    %cst_59 = arith.constant 1.000000e+00 : f32
    %111 = vector.broadcast %cst_59 : f32 to vector<8x1xf32>
    %112 = arith.addf %111, %110 : vector<8x1xf32>
    %113 = arith.divf %111, %112 : vector<8x1xf32>
    %c0_60 = arith.constant 0 : index
    %c0_61 = arith.constant 0 : index
    %114 = vector.load %arg14[%c0_60, %c0_61] : memref<8x1xf32, #tpu.memory_space<vmem>>, vector<8x1xf32>
    tpu.vector_store %arg14[%c0_60, %c0_61], %113 {strides = array<i32>} : memref<8x1xf32, #tpu.memory_space<vmem>>, vector<8x1xf32>,
    return
  }
  func.func @transform_0(%arg0: i32) -> (i32, i32) {
    %c0_i32 = arith.constant 0 : i32
    %c0_i32_0 = arith.constant 0 : i32
    return %arg0, %c0_i32 : i32, i32
  }
  func.func @transform_1(%arg0: i32) -> (i32, i32) {
    %c0_i32 = arith.constant 0 : i32
    %c0_i32_0 = arith.constant 0 : i32
    %c0_i32_1 = arith.constant 0 : i32
    return %c0_i32, %c0_i32_0 : i32, i32
  }
  func.func @transform_2(%arg0: i32) -> (i32, i32) {
    %c0_i32 = arith.constant 0 : i32
    %c0_i32_0 = arith.constant 0 : i32
    %c0_i32_1 = arith.constant 0 : i32
    return %c0_i32, %c0_i32_0 : i32, i32
  }
  func.func @transform_3(%arg0: i32) -> (i32, i32) {
    %c0_i32 = arith.constant 0 : i32
    %c0_i32_0 = arith.constant 0 : i32
    %c0_i32_1 = arith.constant 0 : i32
    return %c0_i32, %c0_i32_0 : i32, i32
  }
  func.func @transform_4(%arg0: i32) -> (i32, i32) {
    %c0_i32 = arith.constant 0 : i32
    %c0_i32_0 = arith.constant 0 : i32
    %c0_i32_1 = arith.constant 0 : i32
    return %c0_i32, %c0_i32_0 : i32, i32
  }
  func.func @transform_5(%arg0: i32) -> (i32, i32) {
    %c0_i32 = arith.constant 0 : i32
    %c0_i32_0 = arith.constant 0 : i32
    %c0_i32_1 = arith.constant 0 : i32
    return %c0_i32, %c0_i32_0 : i32, i32
  }
  func.func @transform_6(%arg0: i32) -> (i32, i32) {
    %c0_i32 = arith.constant 0 : i32
    %c0_i32_0 = arith.constant 0 : i32
    %c0_i32_1 = arith.constant 0 : i32
    return %c0_i32, %c0_i32_0 : i32, i32
  }
  func.func @transform_7(%arg0: i32) -> (i32, i32, i32) {
    %c0_i32 = arith.constant 0 : i32
    %c0_i32_0 = arith.constant 0 : i32
    %c0_i32_1 = arith.constant 0 : i32
    %c0_i32_2 = arith.constant 0 : i32
    return %c0_i32, %c0_i32_0, %c0_i32_1 : i32, i32, i32
  }
  func.func @transform_8(%arg0: i32) -> (i32, i32, i32) {
    %c0_i32 = arith.constant 0 : i32
    %c0_i32_0 = arith.constant 0 : i32
    %c0_i32_1 = arith.constant 0 : i32
    %c0_i32_2 = arith.constant 0 : i32
    return %c0_i32, %c0_i32_0, %c0_i32_1 : i32, i32, i32
  }
  func.func @transform_9(%arg0: i32) -> (i32, i32, i32) {
    %c0_i32 = arith.constant 0 : i32
    %c0_i32_0 = arith.constant 0 : i32
    %c0_i32_1 = arith.constant 0 : i32
    %c0_i32_2 = arith.constant 0 : i32
    return %c0_i32, %c0_i32_0, %c0_i32_1 : i32, i32, i32
  }
  func.func @transform_10(%arg0: i32) -> (i32, i32, i32) {
    %c0_i32 = arith.constant 0 : i32
    %c0_i32_0 = arith.constant 0 : i32
    %c0_i32_1 = arith.constant 0 : i32
    %c0_i32_2 = arith.constant 0 : i32
    return %c0_i32, %c0_i32_0, %c0_i32_1 : i32, i32, i32
  }
  func.func @transform_11(%arg0: i32) -> (i32, i32) {
    %c0_i32 = arith.constant 0 : i32
    %c0_i32_0 = arith.constant 0 : i32
    %c0_i32_1 = arith.constant 0 : i32
    return %c0_i32, %c0_i32_0 : i32, i32
  }
  func.func @transform_12(%arg0: i32) -> (i32, i32) {
    %c0_i32 = arith.constant 0 : i32
    %c0_i32_0 = arith.constant 0 : i32
    %c0_i32_1 = arith.constant 0 : i32
    return %c0_i32, %c0_i32_0 : i32, i32
  }
  func.func @transform_13(%arg0: i32) -> (i32, i32) {
    %c0_i32 = arith.constant 0 : i32
    %c0_i32_0 = arith.constant 0 : i32
    return %arg0, %c0_i32 : i32, i32
  }
}

</mosaic_0001>

<bundles_post_ra>
// kernel: tpu_custom_call.1
= control target key start
LH: loop header
LB: loop body
LE: loop exit
PB: predicated region body
PF: predicated region fallthrough
CT: control target
= control target key end

     0   :  { %s2144_s0 = inlined_call_operand.hbm [shape: f32[8,128], index: 0, kind: input, shape index: {}]   ;;  %s2145_s1 = inlined_call_operand.hbm [shape: bf16[128,256], index: 1, kind: input, shape index: {}]   ;;  %s2146_s2 = inlined_call_operand.vmem [shape: f32[1,256], index: 2, kind: input, shape index: {}]   ;;  %s2147_s3 = inlined_call_operand.hbm [shape: bf16[256,256], index: 3, kind: input, shape index: {}]   ;;  %s2148_s4 = inlined_call_operand.vmem [shape: f32[1,256], index: 4, kind: input, shape index: {}]   ;;  %s2149_s5 = inlined_call_operand.vmem [shape: f32[1,128], index: 5, kind: input, shape index: {}]   ;;  %s2150_s6 = inlined_call_operand.<no memory space> [shape: f32[1,1], index: 6, kind: input, shape index: {}]   ;;  %s2151_s7 = inlined_call_operand.hbm [shape: bf16[2,128,256], index: 7, kind: input, shape index: {}]   ;;  %s2152_s8 = inlined_call_operand.hbm [shape: bf16[2,128,128], index: 8, kind: input, shape index: {}]   ;;  %s2153_s9 = inlined_call_operand.hbm [shape: bf16[2,128,128], index: 9, kind: input, shape index: {}]   ;;  %s2154_s10 = inlined_call_operand.vmem [shape: f32[2,1,128], index: 10, kind: input, shape index: {}]   ;;  %s2155_s11 = inlined_call_operand.vmem [shape: f32[1,128], index: 11, kind: input, shape index: {}]   ;;  %s2156_s12 = inlined_call_operand.vmem [shape: f32[1,128], index: 12, kind: input, shape index: {}]   ;;  %s2157_s13 = inlined_call_operand.vmem [shape: f32[8,1], index: 13, kind: output, shape index: {}]  }
   0x1   :  { %v18_v0 = vstv %s2150_s6 }
   0x2   :  { %19 = vst [vmem:[#allocation2] sm:$0x1] %v18_v0 }
   0x3   :  { %20 = vsyncpa [#allocation4], 0 }
   0x4   :  { %21 = vsyncpa [#allocation6], 0 }
   0x5   :  { %22 = vsyncpa [#allocation9], 0 }
   0x6   :  { %23 = vsyncpa [#allocation12], 0  ;;  %s1890_s27 = smov [#allocation5]   ;;  %s1750_s14 = scalar_lea.hbm %s2145_s1, 2048 }
   0x7   :  { %s39_s28 = sshll.u32 %s1890_s27, 4  ;;  %p1751_p0 = scmp.ne.s32.totalorder %s2145_s1, %s1750_s14  ;;  %s40_s28 = int_to_ptr.vmem [resolvable:$true] %s39_s28 }
   0x8   :  { %p1754_p1 = scmp.lt.u32.totalorder %s1750_s14, %s2145_s1 }
   0xa   :  { %p1756_p2 = pnand %p1754_p1, %p1751_p0 }
   0xc   :  { %1759 = shalt.err (!%p1756_p2)
}
   0xd   :  { %s1760_s6 = scalar_lea.vmem %s40_s28, 2048  ;;  %p1765_p4 = scmp.lt.s32.totalorder %s40_s28, %s40_s28 }
   0xe   :  { %p1761_p3 = scmp.ne.s32.totalorder %s40_s28, %s1760_s6  ;;  %p1766_p5 = scmp.lt.s32.totalorder %s1760_s6, %s1760_s6 }
  0x10   :  { %p1767_p6 = por %p1766_p5, %p1765_p4 }
  0x12   :  { %p1768_p7 = pnand %p1767_p6, %p1761_p3 }
  0x14   :  { %1771 = shalt.err (!%p1768_p7)
}
  0x15   :  { %s1891_s19 = smov 128   ;;  %s1892_s20 = smov 8  }
  0x16   :  { %45 = dma.hbm_to_vmem [thread:$0]  %s2145_s1, 2048, %s40_s28, [#allocation6], %s1891_s19, %s1891_s19, %s1892_s20  }
  0x17   :  { %s1893_s23 = smov [#allocation8]   ;;  %s1894_s25 = smov [#allocation3]  }
  0x18   :  { %s71_s24 = sshll.u32 %s1893_s23, 4  ;;  %s30_s26 = sshll.u32 %s1894_s25, 4  ;;  %s72_s24 = int_to_ptr.vmem [resolvable:$true] %s71_s24  ;;  %s31_s26 = int_to_ptr.vmem [resolvable:$true] %s30_s26 }
  0x19   :  { %s1772_s30 = scalar_lea.hbm %s2151_s7, 4096 }
  0x1a   :  { %p1773_p8 = scmp.ne.s32.totalorder %s2151_s7, %s1772_s30  ;;  %p1776_p9 = scmp.lt.u32.totalorder %s1772_s30, %s2151_s7 }
  0x1c   :  { %p1778_p10 = pnand %p1776_p9, %p1773_p8 }
  0x1e   :  { %1781 = shalt.err (!%p1778_p10)
}
  0x1f   :  { %s1782_s1 = scalar_lea.vmem %s72_s24, 4096  ;;  %p1787_p12 = scmp.lt.s32.totalorder %s72_s24, %s72_s24 }
  0x20   :  { %p1783_p11 = scmp.ne.s32.totalorder %s72_s24, %s1782_s1  ;;  %p1788_p13 = scmp.lt.s32.totalorder %s1782_s1, %s1782_s1 }
  0x22   :  { %p1789_p0 = por %p1788_p13, %p1787_p12 }
  0x24   :  { %p1790_p1 = pnand %p1789_p0, %p1783_p11 }
  0x26   :  { %1793 = shalt.err (!%p1790_p1)
}
  0x27   :  { %77 = dma.hbm_to_vmem [thread:$0]  %s2151_s7, 4096, %s72_s24, [#allocation9], %s1891_s19, %s1891_s19, %s1892_s20  }
  0x28   :  { %s1794_s22 = scalar_lea.hbm %s2144_s0, 128 }
  0x29   :  { %p1795_p2 = scmp.ne.s32.totalorder %s2144_s0, %s1794_s22  ;;  %p1798_p3 = scmp.lt.u32.totalorder %s1794_s22, %s2144_s0 }
  0x2b   :  { %p1800_p4 = pnand %p1798_p3, %p1795_p2 }
  0x2d   :  { %1803 = shalt.err (!%p1800_p4)
}
  0x2e   :  { %s1804_s30 = scalar_lea.vmem %s31_s26, 128  ;;  %p1809_p6 = scmp.lt.s32.totalorder %s31_s26, %s31_s26 }
  0x2f   :  { %p1805_p5 = scmp.ne.s32.totalorder %s31_s26, %s1804_s30  ;;  %p1810_p7 = scmp.lt.s32.totalorder %s1804_s30, %s1804_s30 }
  0x31   :  { %p1811_p8 = por %p1810_p7, %p1809_p6 }
  0x33   :  { %p1812_p9 = pnand %p1811_p8, %p1805_p5 }
  0x35   :  { %1815 = shalt.err (!%p1812_p9)
}
  0x36   :  { %33 = dma.hbm_to_vmem [thread:$0]  %s2144_s0, 128, %s31_s26, [#allocation4]  }
  0x37   :  { %s1895_s14 = smov [#allocation7]   ;;  %s1896_s16 = smov [#allocation10]  }
  0x38   :  { %s53_s15 = sshll.u32 %s1895_s14, 4  ;;  %s83_s17 = sshll.u32 %s1896_s16, 4  ;;  %s54_s15 = int_to_ptr.vmem [resolvable:$true] %s53_s15  ;;  %s84_s17 = int_to_ptr.vmem [resolvable:$true] %s83_s17 }
  0x39   :  { %s1816_s18 = scalar_lea.hbm %s2147_s3, 4096 }
  0x3a   :  { %p1817_p10 = scmp.ne.s32.totalorder %s2147_s3, %s1816_s18  ;;  %p1820_p11 = scmp.lt.u32.totalorder %s1816_s18, %s2147_s3 }
  0x3c   :  { %p1822_p12 = pnand %p1820_p11, %p1817_p10 }
  0x3e   :  { %1825 = shalt.err (!%p1822_p12)
}
  0x3f   :  { %s1826_s0 = scalar_lea.vmem %s54_s15, 4096  ;;  %p1831_p0 = scmp.lt.s32.totalorder %s54_s15, %s54_s15 }
  0x40   :  { %p1827_p13 = scmp.ne.s32.totalorder %s54_s15, %s1826_s0  ;;  %p1832_p1 = scmp.lt.s32.totalorder %s1826_s0, %s1826_s0 }
  0x42   :  { %p1833_p2 = por %p1832_p1, %p1831_p0 }
  0x44   :  { %p1834_p3 = pnand %p1833_p2, %p1827_p13 }
  0x46   :  { %1837 = shalt.err (!%p1834_p3)
}
  0x47   :  { %59 = dma.hbm_to_vmem [thread:$0]  %s2147_s3, 4096, %s54_s15, [#allocation6], %s1891_s19, %s1891_s19, %s1892_s20  }
  0x48   :  { %s1838_s30 = scalar_lea.hbm %s2152_s8, 2048 }
  0x49   :  { %p1839_p4 = scmp.ne.s32.totalorder %s2152_s8, %s1838_s30  ;;  %p1842_p5 = scmp.lt.u32.totalorder %s1838_s30, %s2152_s8 }
  0x4b   :  { %p1844_p6 = pnand %p1842_p5, %p1839_p4 }
  0x4d   :  { %1847 = shalt.err (!%p1844_p6)
}
  0x4e   :  { %s1848_s1 = scalar_lea.vmem %s84_s17, 2048  ;;  %p1853_p8 = scmp.lt.s32.totalorder %s84_s17, %s84_s17 }
  0x4f   :  { %p1849_p7 = scmp.ne.s32.totalorder %s84_s17, %s1848_s1  ;;  %p1854_p9 = scmp.lt.s32.totalorder %s1848_s1, %s1848_s1 }
  0x51   :  { %p1855_p10 = por %p1854_p9, %p1853_p8 }
  0x53   :  { %p1856_p11 = pnand %p1855_p10, %p1849_p7 }
  0x55   :  { %1859 = shalt.err (!%p1856_p11)
}
  0x56   :  { %s1897_s3 = smov 64   ;;  %s1898_s19 = smov 4  }
  0x57   :  { %89 = dma.hbm_to_vmem [thread:$0]  %s2152_s8, 2048, %s84_s17, [#allocation9], %s1897_s3, %s1897_s3, %s1898_s19  }
  0x58   :  { %s1899_s28 = smov [#allocation11]   ;;  %s1860_s22 = scalar_lea.hbm %s2153_s9, 2048 }
  0x59   :  { %s95_s18 = sshll.u32 %s1899_s28, 4  ;;  %p1861_p12 = scmp.ne.s32.totalorder %s2153_s9, %s1860_s22  ;;  %s96_s18 = int_to_ptr.vmem [resolvable:$true] %s95_s18 }
  0x5a   :  { %p1864_p13 = scmp.lt.u32.totalorder %s1860_s22, %s2153_s9 }
  0x5c   :  { %p1866_p0 = pnand %p1864_p13, %p1861_p12 }
  0x5e   :  { %1869 = shalt.err (!%p1866_p0)
}
  0x5f   :  { %s1870_s27 = scalar_lea.vmem %s96_s18, 2048  ;;  %p1875_p2 = scmp.lt.s32.totalorder %s96_s18, %s96_s18 }
  0x60   :  { %p1871_p1 = scmp.ne.s32.totalorder %s96_s18, %s1870_s27  ;;  %p1876_p3 = scmp.lt.s32.totalorder %s1870_s27, %s1870_s27 }
  0x62   :  { %p1877_p4 = por %p1876_p3, %p1875_p2 }
  0x64   :  { %p1878_p5 = pnand %p1877_p4, %p1871_p1 }
  0x66   :  { %1881 = shalt.err (!%p1878_p5)
}
  0x67   :  { %101 = dma.hbm_to_vmem [thread:$0]  %s2153_s9, 2048, %s96_s18, [#allocation12], %s1897_s3, %s1897_s3, %s1898_s19  }
  0x68   :  { %1882 = dma.done.wait [#allocation4], 128  }
  0x69   :  { %1883 = vsyncadd [#allocation4], 4294967168 }
  0x6a   :  { %1884 = dma.done.wait [#allocation6], 6144  }
  0x6b   :  { %1885 = vsyncadd [#allocation6], 4294961152 }
  0x6c   :  { %1886 = dma.done.wait [#allocation9], 6144  }
  0x6d   :  { %1887 = vsyncadd [#allocation9], 4294961152 }
  0x6e   :  { %1888 = dma.done.wait [#allocation12], 2048  }
  0x6f   :  { %1889 = vsyncadd [#allocation12], 4294965248  ;;  %v1900_v1 = vmov 0   ;;  %v1578_v2 = vld [vmem:[#allocation5 + $0x4] ss:$8 sps:$4 sm:$0xff]   ;;  %v2058_v23 = vld [vmem:[#allocation3] sm:$0xff] }
  0x70   :  { %269 = vmatprep.mubr.bf16.mxu0 %v1900_v1  ;;  %v1580_v3 = vld [vmem:[#allocation5] ss:$8 sps:$4 sm:$0xff]   ;;  %237 = vmatprep.subr.bf16.mxu0 %v1578_v2  ;;  %v1581_v4 = vld [vmem:[#allocation5 + $0x14] ss:$8 sps:$4 sm:$0xff]   ;;  %v1583_v5 = vld [vmem:[#allocation5 + $0x10] ss:$8 sps:$4 sm:$0xff]   ;;  %v2062_v26 = vpack.c.bf16 %v2058_v23, %v2058_v23 }
  0x71   :  { %238 = vmatpush1.bf16.msra.mxu0 %v1580_v3  ;;  %v1584_v6 = vld [vmem:[#allocation5 + $0x24] ss:$8 sps:$4 sm:$0xff]   ;;  %v1586_v7 = vld [vmem:[#allocation5 + $0x20] ss:$8 sps:$4 sm:$0xff]   ;;  %v1587_v8 = vld [vmem:[#allocation5 + $0x34] ss:$8 sps:$4 sm:$0xff]  }
  0x72   :  { %239 = vmatprep.subr.bf16.mxu0 %v1581_v4  ;;  %v1589_v9 = vld [vmem:[#allocation5 + $0x30] ss:$8 sps:$4 sm:$0xff]   ;;  %v1590_v10 = vld [vmem:[#allocation5 + $0x44] ss:$8 sps:$4 sm:$0xff]   ;;  %v1592_v11 = vld [vmem:[#allocation5 + $0x40] ss:$8 sps:$4 sm:$0xff]  }
  0x73   :  { %v1593_v12 = vld [vmem:[#allocation5 + $0x54] ss:$8 sps:$4 sm:$0xff]   ;;  %v1595_v13 = vld [vmem:[#allocation5 + $0x50] ss:$8 sps:$4 sm:$0xff]   ;;  %v1596_v14 = vld [vmem:[#allocation5 + $0x64] ss:$8 sps:$4 sm:$0xff]  }
  0x74   :  { %v1598_v15 = vld [vmem:[#allocation5 + $0x60] ss:$8 sps:$4 sm:$0xff]   ;;  %v1626_v16 = vld [vmem:[#allocation7 + $0x4] ss:$8 sps:$4 sm:$0xff]   ;;  %v1629_v18 = vld [vmem:[#allocation7 + $0x14] ss:$8 sps:$4 sm:$0xff]  }
  0x75   :  { %240 = vmatpush1.bf16.msra.mxu0 %v1583_v5  ;;  %v1628_v17 = vld [vmem:[#allocation7] ss:$8 sps:$4 sm:$0xff]   ;;  %v1599_v19 = vld [vmem:[#allocation5 + $0x74] ss:$8 sps:$4 sm:$0xff]   ;;  %486 = vmatprep.subr.bf16.mxu1 %v1626_v16  ;;  %v1631_v20 = vld [vmem:[#allocation7 + $0x10] ss:$8 sps:$4 sm:$0xff]  }
  0x76   :  { %241 = vmatprep.subr.bf16.mxu0 %v1584_v6  ;;  %487 = vmatpush1.bf16.msra.mxu1 %v1628_v17  ;;  %v1601_v21 = vld [vmem:[#allocation5 + $0x70] ss:$8 sps:$4 sm:$0xff]   ;;  %v1632_v22 = vld [vmem:[#allocation7 + $0x24] ss:$8 sps:$4 sm:$0xff]   ;;  %v1634_v25 = vld [vmem:[#allocation7 + $0x20] ss:$8 sps:$4 sm:$0xff]  }
  0x77   :  { %488 = vmatprep.subr.bf16.mxu1 %v1629_v18  ;;  %v1604_v24 = vld [vmem:[#allocation8 + $0x4] ss:$8 sps:$4 sm:$0xff]   ;;  %v1635_v27 = vld [vmem:[#allocation7 + $0x34] ss:$8 sps:$4 sm:$0xff]   ;;  %v1602_v28 = vld [vmem:[#allocation8] ss:$8 sps:$4 sm:$0xff]  }
  0x78   :  { %v1607_v29 = vld [vmem:[#allocation8 + $0x14] ss:$8 sps:$4 sm:$0xff]   ;;  %v1637_v30 = vld [vmem:[#allocation7 + $0x30] ss:$8 sps:$4 sm:$0xff]   ;;  %v1638_v31 = vld [vmem:[#allocation7 + $0x44] ss:$8 sps:$4 sm:$0xff]  }
  0x79   :  { %242 = vmatpush1.bf16.msra.mxu0 %v1586_v7  ;;  %v1605_v32 = vld [vmem:[#allocation8 + $0x10] ss:$8 sps:$4 sm:$0xff]   ;;  %v1610_v33 = vld [vmem:[#allocation8 + $0x24] ss:$8 sps:$4 sm:$0xff]   ;;  %v1640_v34 = vld [vmem:[#allocation7 + $0x40] ss:$8 sps:$4 sm:$0xff]  }
  0x7a   :  { %243 = vmatprep.subr.bf16.mxu0 %v1587_v8  ;;  %489 = vmatpush1.bf16.msra.mxu1 %v1631_v20  ;;  %v1608_v35 = vld [vmem:[#allocation8 + $0x20] ss:$8 sps:$4 sm:$0xff]   ;;  %v1641_v36 = vld [vmem:[#allocation7 + $0x54] ss:$8 sps:$4 sm:$0xff]   ;;  %v1643_v38 = vld [vmem:[#allocation7 + $0x50] ss:$8 sps:$4 sm:$0xff]  }
  0x7b   :  { %490 = vmatprep.subr.bf16.mxu1 %v1632_v22  ;;  %v1613_v37 = vld [vmem:[#allocation8 + $0x34] ss:$8 sps:$4 sm:$0xff]   ;;  %v1644_v39 = vld [vmem:[#allocation7 + $0x64] ss:$8 sps:$4 sm:$0xff]   ;;  %v1611_v40 = vld [vmem:[#allocation8 + $0x30] ss:$8 sps:$4 sm:$0xff]  }
  0x7c   :  { %v1616_v41 = vld [vmem:[#allocation8 + $0x44] ss:$8 sps:$4 sm:$0xff]   ;;  %v1646_v42 = vld [vmem:[#allocation7 + $0x60] ss:$8 sps:$4 sm:$0xff]   ;;  %v1647_v43 = vld [vmem:[#allocation7 + $0x74] ss:$8 sps:$4 sm:$0xff]  }
  0x7d   :  { %244 = vmatpush1.bf16.msra.mxu0 %v1589_v9  ;;  %v1614_v44 = vld [vmem:[#allocation8 + $0x40] ss:$8 sps:$4 sm:$0xff]   ;;  %v1619_v45 = vld [vmem:[#allocation8 + $0x54] ss:$8 sps:$4 sm:$0xff]   ;;  %v1649_v46 = vld [vmem:[#allocation7 + $0x70] ss:$8 sps:$4 sm:$0xff]  }
  0x7e   :  { %245 = vmatprep.subr.bf16.mxu0 %v1590_v10  ;;  %491 = vmatpush1.bf16.msra.mxu1 %v1634_v25  ;;  %v1650_v47 = vld [vmem:[#allocation7 + $0x84] ss:$8 sps:$4 sm:$0xff]   ;;  %v1617_v48 = vld [vmem:[#allocation8 + $0x50] ss:$8 sps:$4 sm:$0xff]   ;;  %v1652_v50 = vld [vmem:[#allocation7 + $0x80] ss:$8 sps:$4 sm:$0xff]  }
  0x7f   :  { %492 = vmatprep.subr.bf16.mxu1 %v1635_v27  ;;  %v1622_v49 = vld [vmem:[#allocation8 + $0x64] ss:$8 sps:$4 sm:$0xff]   ;;  %v1653_v51 = vld [vmem:[#allocation7 + $0x94] ss:$8 sps:$4 sm:$0xff]   ;;  %v1620_v52 = vld [vmem:[#allocation8 + $0x60] ss:$8 sps:$4 sm:$0xff]  }
  0x80   :  { %v1625_v53 = vld [vmem:[#allocation8 + $0x74] ss:$8 sps:$4 sm:$0xff]   ;;  %v1655_v54 = vld [vmem:[#allocation7 + $0x90] ss:$8 sps:$4 sm:$0xff]   ;;  %v1656_v55 = vld [vmem:[#allocation7 + $0xa4] ss:$8 sps:$4 sm:$0xff]  }
  0x81   :  { %246 = vmatpush1.bf16.msra.mxu0 %v1592_v11  ;;  %v1623_v56 = vld [vmem:[#allocation8 + $0x70] ss:$8 sps:$4 sm:$0xff]   ;;  %v1658_v57 = vld [vmem:[#allocation7 + $0xa0] ss:$8 sps:$4 sm:$0xff]   ;;  %v1659_v58 = vld [vmem:[#allocation7 + $0xb4] ss:$8 sps:$4 sm:$0xff]  }
  0x82   :  { %247 = vmatprep.subr.bf16.mxu0 %v1593_v12  ;;  %493 = vmatpush1.bf16.msra.mxu1 %v1637_v30  ;;  %v1661_v59 = vld [vmem:[#allocation7 + $0xb0] ss:$8 sps:$4 sm:$0xff]   ;;  %v1662_v60 = vld [vmem:[#allocation7 + $0xc4] ss:$8 sps:$4 sm:$0xff]   ;;  %v1664_v61 = vld [vmem:[#allocation7 + $0xc0] ss:$8 sps:$4 sm:$0xff]  }
  0x83   :  { %494 = vmatprep.subr.bf16.mxu1 %v1638_v31  ;;  %v1665_v62 = vld [vmem:[#allocation7 + $0xd4] ss:$8 sps:$4 sm:$0xff]   ;;  %v1667_v63 = vld [vmem:[#allocation7 + $0xd0] ss:$8 sps:$4 sm:$0xff]   ;;  %v1668_v0 = vld [vmem:[#allocation7 + $0xe4] ss:$8 sps:$4 sm:$0xff]  }
  0x84   :  { %v1670_v2 = vld [vmem:[#allocation7 + $0xe0] ss:$8 sps:$4 sm:$0xff]   ;;  %v1671_v3 = vld [vmem:[#allocation7 + $0xf4] ss:$8 sps:$4 sm:$0xff]   ;;  %v1673_v4 = vld [vmem:[#allocation7 + $0xf0] ss:$8 sps:$4 sm:$0xff]  }
  0x85   :  { %248 = vmatpush1.bf16.msra.mxu0 %v1595_v13  ;;  %v1674_v5 = vld [vmem:[#allocation10] sm:$0xff]   ;;  %v1901_v6 = vmov 0.0   ;;  %v1675_v7 = vld [vmem:[#allocation10 + $0x8] sm:$0xff]   ;;  %v1676_v8 = vld [vmem:[#allocation10 + $0x10] sm:$0xff]   ;;  %vm1902_vm0 = vmmov 0   ;;  %vm1319_vm1 = vcmask 7168  }
  0x86   :  { %249 = vmatprep.subr.bf16.mxu0 %v1596_v14  ;;  %495 = vmatpush1.bf16.msra.mxu1 %v1640_v34  ;;  %v1677_v9 = vld [vmem:[#allocation10 + $0x18] sm:$0xff]   ;;  %v1678_v10 = vld [vmem:[#allocation10 + $0x20] sm:$0xff]   ;;  %v1679_v11 = vld [vmem:[#allocation10 + $0x28] sm:$0xff]   ;;  %v147_v14 = vlaneseq }
  0x87   :  { %496 = vmatprep.subr.bf16.mxu1 %v1641_v36  ;;  %v1680_v12 = vld [vmem:[#allocation10 + $0x30] sm:$0xff]   ;;  %v1681_v13 = vld [vmem:[#allocation10 + $0x38] sm:$0xff]  }
  0x88   :  { %v144_v17 = vld [vmem:[%s2146_s2] sm:$0x3] }
  0x89   :  { %250 = vmatpush1.bf16.msra.mxu0 %v1598_v15  ;;  %v148_v15 = vshrl.u32 %v147_v14, 7 }
  0x8a   :  { %251 = vmatprep.subr.bf16.mxu0 %v1599_v19  ;;  %497 = vmatpush1.bf16.msra.mxu1 %v1643_v38  ;;  %v1682_v38 = vld [vmem:[#allocation11] sm:$0xff]  }
  0x8b   :  { %498 = vmatprep.subr.bf16.mxu1 %v1644_v39  ;;  %v149_v16 = vsub.s32 0, %v148_v15  ;;  %v153_v18 = vsub.s32 1, %v148_v15  ;;  %v1683_v39 = vld [vmem:[#allocation11 + $0x8] sm:$0xff]   ;;  %v1707_v15 = vld [vmem:[#allocation8 + $0xd4] ss:$8 sps:$4 sm:$0xff]  }
  0x8d   :  { %252 = vmatpush1.bf16.msra.mxu0 %v1601_v21  ;;  %v150_v19 = vrot.slane %v144_v17, %v149_v16  ;;  %v154_v20 = vrot.slane %v144_v17, %v153_v18  ;;  %v1705_v17 = vld [vmem:[#allocation8 + $0xd0] ss:$8 sps:$4 sm:$0xff]  }
  0x8e   :  { %654 = vmatprep.subr.bf16.mxu0 %v1604_v24  ;;  %499 = vmatpush1.bf16.msra.mxu1 %v1646_v42 }
  0x8f   :  { %500 = vmatprep.subr.bf16.mxu1 %v1647_v43 }
  0x90   :  { %270 = vmatmul.mubr.bf16.vlgmr.msra.gmra.mrb[0].mxu0 %v2062_v26 }
  0x91   :  { %655 = vmatpush1.bf16.msra.mxu0 %v1602_v28  ;;  %686 = vmatprep.mubr.bf16.mxu0 %v1900_v1 }
  0x92   :  { %656 = vmatprep.subr.bf16.mxu0 %v1607_v29  ;;  %501 = vmatpush1.bf16.msra.mxu1 %v1649_v46  ;;  %v1687_v46 = vld [vmem:[#allocation11 + $0x28] sm:$0xff]  }
  0x93   :  { %502 = vmatprep.subr.bf16.mxu1 %v1650_v47  ;;  %v312_v47 = vld [vmem:[%s2148_s4] sm:$0x3] }
  0x95   :  { %657 = vmatpush1.bf16.msra.mxu0 %v1605_v32 }
  0x96   :  { %658 = vmatprep.subr.bf16.mxu0 %v1610_v33  ;;  %503 = vmatpush1.bf16.msra.mxu1 %v1652_v50  ;;  %v323_v50 = vrot.slane %v312_v47, %v153_v18 }
  0x97   :  { %504 = vmatprep.subr.bf16.mxu1 %v1653_v51  ;;  %v1689_v51 = vld [vmem:[#allocation11 + $0x38] sm:$0xff]  }
  0x99   :  { %659 = vmatpush1.bf16.msra.mxu0 %v1608_v35 }
  0x9a   :  { %660 = vmatprep.subr.bf16.mxu0 %v1613_v37  ;;  %505 = vmatpush1.bf16.msra.mxu1 %v1655_v54 }
  0x9b   :  { %506 = vmatprep.subr.bf16.mxu1 %v1656_v55 }
  0x9d   :  { %661 = vmatpush1.bf16.msra.mxu0 %v1611_v40  ;;  %v1684_v40 = vld [vmem:[#allocation11 + $0x10] sm:$0xff]  }
  0x9e   :  { %662 = vmatprep.subr.bf16.mxu0 %v1616_v41  ;;  %507 = vmatpush1.bf16.msra.mxu1 %v1658_v57  ;;  %v1377_v57 = vld [vmem:[%s2149_s5] ss:$0 sm:$0xff] }
  0x9f   :  { %508 = vmatprep.subr.bf16.mxu1 %v1659_v58 }
  0xa1   :  { %663 = vmatpush1.bf16.msra.mxu0 %v1614_v44 }
  0xa2   :  { %664 = vmatprep.subr.bf16.mxu0 %v1619_v45  ;;  %509 = vmatpush1.bf16.msra.mxu1 %v1661_v59  ;;  %v1686_v45 = vld [vmem:[#allocation11 + $0x20] sm:$0xff]  }
  0xa3   :  { %510 = vmatprep.subr.bf16.mxu1 %v1662_v60 }
  0xa5   :  { %665 = vmatpush1.bf16.msra.mxu0 %v1617_v48  ;;  %v1688_v48 = vld [vmem:[#allocation11 + $0x30] sm:$0xff]  }
  0xa6   :  { %666 = vmatprep.subr.bf16.mxu0 %v1622_v49  ;;  %511 = vmatpush1.bf16.msra.mxu1 %v1664_v61  ;;  %v319_v49 = vrot.slane %v312_v47, %v149_v16 }
  0xa7   :  { %512 = vmatprep.subr.bf16.mxu1 %v1665_v62  ;;  %v1379_v62 = vld [vmem:[%s2156_s12] ss:$0 sm:$0xff] }
  0xa9   :  { %667 = vmatpush1.bf16.msra.mxu0 %v1620_v52 }
  0xaa   :  { %668 = vmatprep.subr.bf16.mxu0 %v1625_v53  ;;  %513 = vmatpush1.bf16.msra.mxu1 %v1667_v63 }
  0xab   :  { %514 = vmatprep.subr.bf16.mxu1 %v1668_v0  ;;  %v1690_v0 = vld [vmem:[#allocation8 + $0x80] ss:$8 sps:$4 sm:$0xff]  }
  0xad   :  { %669 = vmatpush1.bf16.msra.mxu0 %v1623_v56 }
  0xae   :  { %515 = vmatpush1.bf16.msra.mxu1 %v1670_v2  ;;  %1485 = vmatprep.subr.bf16.mxu0 %v1901_v6  ;;  %v1692_v2 = vld [vmem:[#allocation8 + $0x84] ss:$8 sps:$4 sm:$0xff]  }
  0xaf   :  { %516 = vmatprep.subr.bf16.mxu1 %v1671_v3  ;;  %v1695_v3 = vld [vmem:[#allocation8 + $0x94] ss:$8 sps:$4 sm:$0xff]  }
  0xb0   :  { %687 = vmatmul.mubr.bf16.vlgmr.msra.gmra.mrb[4].mxu0 %v2062_v26 }
  0xb1   :  { %1486 = vmatpush3.bf16.msra.mxu0 %v1674_v5  ;;  %1501 = vmatprep.mubr.msk.bf16.mxu0 %vm1902_vm0, %v1901_v6  ;;  %v1698_v5 = vld [vmem:[#allocation8 + $0xa4] ss:$8 sps:$4 sm:$0xff]  }
  0xb2   :  { %517 = vmatpush1.bf16.msra.mxu1 %v1673_v4  ;;  %1487 = vmatprep.subr.bf16.mxu0 %v1901_v6  ;;  %v1693_v4 = vld [vmem:[#allocation8 + $0x90] ss:$8 sps:$4 sm:$0xff]  }
  0xb3   :  { %1505 = vmatprep.subr.bf16.mxu1 %v1901_v6 }
  0xb5   :  { %1488 = vmatpush3.bf16.msra.mxu0 %v1675_v7  ;;  %v1696_v7 = vld [vmem:[#allocation8 + $0xa0] ss:$8 sps:$4 sm:$0xff]  }
  0xb6   :  { %1489 = vmatprep.subr.bf16.mxu0 %v1901_v6 }
  0xb9   :  { %1490 = vmatpush3.bf16.msra.mxu0 %v1676_v8  ;;  %v1701_v8 = vld [vmem:[#allocation8 + $0xb4] ss:$8 sps:$4 sm:$0xff]  }
  0xba   :  { %1491 = vmatprep.subr.bf16.mxu0 %v1901_v6 }
  0xbd   :  { %1492 = vmatpush3.bf16.msra.mxu0 %v1677_v9  ;;  %v1699_v9 = vld [vmem:[#allocation8 + $0xb0] ss:$8 sps:$4 sm:$0xff]  }
  0xbe   :  { %1493 = vmatprep.subr.bf16.mxu0 %v1901_v6 }
  0xc1   :  { %1494 = vmatpush3.bf16.msra.mxu0 %v1678_v10  ;;  %v1704_v10 = vld [vmem:[#allocation8 + $0xc4] ss:$8 sps:$4 sm:$0xff]  }
  0xc2   :  { %1495 = vmatprep.subr.bf16.mxu0 %v1901_v6 }
  0xc5   :  { %1496 = vmatpush3.bf16.msra.mxu0 %v1679_v11 }
  0xc6   :  { %1497 = vmatprep.subr.bf16.mxu0 %v1901_v6 }
  0xc9   :  { %1498 = vmatpush3.bf16.msra.mxu0 %v1680_v12 }
  0xca   :  { %1499 = vmatprep.subr.bf16.mxu0 %v1901_v6 }
  0xcd   :  { %1500 = vmatpush3.bf16.msra.mxu0 %v1681_v13  ;;  %v1702_v13 = vld [vmem:[#allocation8 + $0xc0] ss:$8 sps:$4 sm:$0xff]  }
  0xce   :  { %1025 = vmatprep.subr.bf16.mxu0 %v1692_v2 }
 0x163   :  { %v271_v21 = vpop.f32.mrb[0].mxu0 }
 0x164   :  { %v272_v22 = vadd.f32 %v271_v21, %v150_v19  ;;  %v273_v24 = vpop.f32.mrb[1].mxu0 }
 0x165   :  { %v274_v25 = vadd.f32 %v273_v24, %v154_v20  ;;  %v275_v26 = vpop.f32.mrb[2].mxu0 }
 0x166   :  { %v278_v27 = vmax.f32 %v272_v22, 0.0  ;;  %v276_v28 = vpop.f32.mrb[3].mxu0  ;;  %v1710_v26 = vld [vmem:[#allocation8 + $0xe4] ss:$8 sps:$4 sm:$0xff]  }
 0x167   :  { %v279_v29 = vmax.f32 %v274_v25, 0.0  ;;  %v1713_v28 = vld [vmem:[#allocation8 + $0xf4] ss:$8 sps:$4 sm:$0xff]  }
 0x168   :  { %v313_v30 = vpack.c.bf16 %v278_v27, %v278_v27  ;;  %v1708_v27 = vld [vmem:[#allocation8 + $0xe0] ss:$8 sps:$4 sm:$0xff]  }
 0x169   :  { %v314_v31 = vpack.c.bf16 %v279_v29, %v279_v29  ;;  %v1711_v29 = vld [vmem:[#allocation8 + $0xf0] ss:$8 sps:$4 sm:$0xff]  }
 0x16b   :  { %518 = vmatprep.mubr.bf16.mxu1 %v314_v31  ;;  %v1715_v31 = vld [vmem:[#allocation10 + $0x48] sm:$0xff]  }
 0x16c   :  { %519 = vmatmul.mubr.bf16.vlgmr.msra.gmra.mrb[0].mxu1 %v313_v30  ;;  %v1714_v30 = vld [vmem:[#allocation10 + $0x40] sm:$0xff]  }
 0x16d   :  { %1521 = vmatprep.mubr.msk.bf16.mxu1 %vm1902_vm0, %v1901_v6  ;;  %1506 = vmatpush3.bf16.msra.mxu1 %v1682_v38 }
 0x16e   :  { %1507 = vmatprep.subr.bf16.mxu1 %v1901_v6 }
 0x171   :  { %1508 = vmatpush3.bf16.msra.mxu1 %v1683_v39 }
 0x172   :  { %1509 = vmatprep.subr.bf16.mxu1 %v1901_v6 }
 0x175   :  { %1510 = vmatpush3.bf16.msra.mxu1 %v1684_v40 }
 0x176   :  { %1511 = vmatprep.subr.bf16.mxu1 %v1901_v6 }
 0x183   :  { %v688_v32 = vpop.f32.mrb[4].mxu0 }
 0x184   :  { %696 = vmax.xlane.f32.xlu0 %v688_v32  ;;  %v690_v33 = vpop.f32.mrb[5].mxu0 }
 0x185   :  { %1730 = vtanh.f32 %v690_v33  ;;  %v692_v34 = vpop.f32.mrb[6].mxu0  ;;  %v1717_v33 = vld [vmem:[#allocation10 + $0x58] sm:$0xff]  }
 0x186   :  { %v693_v35 = vpop.f32.mrb[7].mxu0  ;;  %v1404_v34 = vld [vmem:[%s2154_s10] ss:$0 sm:$0xff] }
 0x18f   :  { %v1731_v36 = vpop.eup %1730 }
 0x190   :  { %v706_v37 = vpack.c.bf16 %v1731_v36, %v1731_v36 }
 0x192   :  { %1502 = vmatmul.mubr.bf16.vlgmr.msra.gmra.mrb[8].mxu0 %v706_v37 }
 0x193   :  { %1057 = vmatprep.mubr.bf16.mxu0 %v1900_v1  ;;  %v1685_v1 = vld [vmem:[#allocation11 + $0x18] sm:$0xff]   ;;  %1026 = vmatpush1.bf16.msra.mxu0 %v1690_v0 }
 0x194   :  { %1512 = vmatpush3.bf16.msra.mxu1 %v1685_v1  ;;  %1027 = vmatprep.subr.bf16.mxu0 %v1695_v3  ;;  %v1720_v1 = vld [vmem:[#allocation10 + $0x70] sm:$0xff]  }
 0x195   :  { %1513 = vmatprep.subr.bf16.mxu1 %v1901_v6 }
 0x197   :  { %1028 = vmatpush1.bf16.msra.mxu0 %v1693_v4 }
 0x198   :  { %1514 = vmatpush3.bf16.msra.mxu1 %v1686_v45  ;;  %1029 = vmatprep.subr.bf16.mxu0 %v1698_v5  ;;  %v1721_v45 = vld [vmem:[#allocation10 + $0x78] sm:$0xff]  }
 0x199   :  { %1515 = vmatprep.subr.bf16.mxu1 %v1901_v6 }
 0x19b   :  { %1030 = vmatpush1.bf16.msra.mxu0 %v1696_v7 }
 0x19c   :  { %1516 = vmatpush3.bf16.msra.mxu1 %v1687_v46  ;;  %1031 = vmatprep.subr.bf16.mxu0 %v1701_v8 }
 0x19d   :  { %1517 = vmatprep.subr.bf16.mxu1 %v1901_v6 }
 0x19f   :  { %1032 = vmatpush1.bf16.msra.mxu0 %v1699_v9 }
 0x1a0   :  { %1518 = vmatpush3.bf16.msra.mxu1 %v1688_v48  ;;  %1033 = vmatprep.subr.bf16.mxu0 %v1704_v10 }
 0x1a1   :  { %1519 = vmatprep.subr.bf16.mxu1 %v1901_v6 }
 0x1a3   :  { %1034 = vmatpush1.bf16.msra.mxu0 %v1702_v13 }
 0x1a4   :  { %1520 = vmatpush3.bf16.msra.mxu1 %v1689_v51  ;;  %1035 = vmatprep.subr.bf16.mxu0 %v1707_v15 }
 0x1a5   :  { %1525 = vmatprep.subr.bf16.mxu1 %v1901_v6 }
 0x1a7   :  { %1036 = vmatpush1.bf16.msra.mxu0 %v1705_v17 }
 0x1a8   :  { %1037 = vmatprep.subr.bf16.mxu0 %v1710_v26 }
 0x1ab   :  { %1038 = vmatpush1.bf16.msra.mxu0 %v1708_v27 }
 0x1ac   :  { %1039 = vmatprep.subr.bf16.mxu0 %v1713_v28 }
 0x1af   :  { %1040 = vmatpush1.bf16.msra.mxu0 %v1711_v29 }
 0x1b0   :  { %1545 = vmatprep.subr.bf16.mxu0 %v1901_v6 }
 0x211   :  { %v697_v41 = vpop.xlane.xlu0 %696 }
 0x212   :  { %v698_v42 = vsub.f32 %v688_v32, %v697_v41  ;;  %v1716_v32 = vld [vmem:[#allocation10 + $0x50] sm:$0xff]  }
 0x214   :  { %v699_v43 = vmul.f32 1.442695, %v698_v42 }
 0x216   :  { %1732 = vpow2.f32 %v699_v43  ;;  %v1718_v43 = vld [vmem:[#allocation10 + $0x60] sm:$0xff]  }
 0x220   :  { %v2087_v44 = vpop.eup %1732 }
 0x221   :  { %701 = vadd.xlane.f32.xlu0 %v2087_v44 }
 0x23f   :  { %v520_v52 = vpop.f32.mrb[0].mxu1 }
 0x240   :  { %v521_v53 = vadd.f32 %v520_v52, %v319_v49  ;;  %v522_v54 = vpop.f32.mrb[1].mxu1  ;;  %v1722_v52 = vld [vmem:[#allocation11 + $0x40] sm:$0xff]  }
 0x241   :  { %v523_v55 = vadd.f32 %v522_v54, %v323_v50  ;;  %v524_v56 = vpop.f32.mrb[2].mxu1  ;;  %v1724_v54 = vld [vmem:[#allocation11 + $0x50] sm:$0xff]  }
 0x242   :  { %v527_v58 = vmax.f32 %v521_v53, 0.0  ;;  %v525_v59 = vpop.f32.mrb[3].mxu1  ;;  %v1723_v53 = vld [vmem:[#allocation11 + $0x48] sm:$0xff]  }
 0x243   :  { %v528_v60 = vmax.f32 %v523_v55, 0.0  ;;  %v1725_v59 = vld [vmem:[#allocation11 + $0x58] sm:$0xff]  }
 0x244   :  { %v536_v61 = vmul.f32 %v1377_v57, %v527_v58 }
 0x245   :  { %v555_v63 = vmul.f32 %v1379_v62, %v528_v60  ;;  %v1726_v60 = vld [vmem:[#allocation11 + $0x60] sm:$0xff]   ;;  %v1728_v62 = vld [vmem:[#allocation11 + $0x70] sm:$0xff]  }
 0x246   :  { %537 = vadd.xlane.f32.xlu0 %v536_v61  ;;  %v1727_v61 = vld [vmem:[#allocation11 + $0x68] sm:$0xff]  }
 0x24a   :  { %556 = vadd.xlane.f32.xlu0 %v555_v63  ;;  %v1729_v63 = vld [vmem:[#allocation11 + $0x78] sm:$0xff]  }
 0x265   :  { %v805_v11 = vpop.f32.mrb[8].mxu0 }
 0x266   :  { %v1503_v12 = vpop.f32.mrb[9].mxu0 }
 0x267   :  { %v808_v14 = vpop.f32.mrb[10].mxu0 }
 0x268   :  { %v1504_v16 = vpop.f32.mrb[11].mxu0 }
 0x2ae   :  { %v702_v18 = vpop.xlane.xlu0 %701 }
 0x2af   :  { %1734 = vrcp.f32 %v702_v18 }
 0x2b0   :  { %1736 = vtanh.f32 %v805_v11 }
 0x2b9   :  { %v1735_v19 = vpop.eup %1734 }
 0x2ba   :  { %v704_v20 = vmul.f32 32.0, %v1735_v19  ;;  %v1737_v22 = vpop.eup %1736  ;;  %v1447_v19 = vld [vmem:[%s2155_s11] ss:$0 sm:$0xff] }
 0x2bc   :  { %v705_v21 = vmul.f32 %v2087_v44, %v704_v20  ;;  %v1719_v44 = vld [vmem:[#allocation10 + $0x68] sm:$0xff]  }
 0x2be   :  { %v812_v24 = vmul.f32 %v1737_v22, %v705_v21  ;;  %v1378_v22 = vld [vmem:[#allocation2] ss:$0 sm:$0xff] }
 0x2c0   :  { %v813_v25 = vpack.c.bf16 %v812_v24, %v812_v24 }
 0x2c2   :  { %1522 = vmatmul.mubr.bf16.vlgmr.msra.gmra.mrb[4].mxu1 %v813_v25 }
 0x2c3   :  { %1541 = vmatprep.mubr.msk.bf16.mxu1 %vm1902_vm0, %v1901_v6  ;;  %1526 = vmatpush3.bf16.msra.mxu1 %v1714_v30 }
 0x2c4   :  { %1527 = vmatprep.subr.bf16.mxu1 %v1901_v6 }
 0x2c7   :  { %1528 = vmatpush3.bf16.msra.mxu1 %v1715_v31 }
 0x2c8   :  { %1529 = vmatprep.subr.bf16.mxu1 %v1901_v6 }
 0x2cb   :  { %1530 = vmatpush3.bf16.msra.mxu1 %v1716_v32 }
 0x2cc   :  { %1531 = vmatprep.subr.bf16.mxu1 %v1901_v6 }
 0x2cf   :  { %1532 = vmatpush3.bf16.msra.mxu1 %v1717_v33 }
 0x2d0   :  { %1533 = vmatprep.subr.bf16.mxu1 %v1901_v6 }
 0x2d3   :  { %1534 = vmatpush3.bf16.msra.mxu1 %v1718_v43  ;;  %v538_v24 = vpop.xlane.xlu0 %537 }
 0x2d4   :  { %1535 = vmatprep.subr.bf16.mxu1 %v1901_v6  ;;  %v546_v25 = vadd.f32 %v1378_v22, %v538_v24 }
 0x2d6   :  { %v547_v26 = vmax.f32 %v546_v25, 0.0 }
 0x2d7   :  { %1536 = vmatpush3.bf16.msra.mxu1 %v1719_v44  ;;  %v557_v29 = vpop.xlane.xlu0 %556 }
 0x2d8   :  { %1537 = vmatprep.subr.bf16.mxu1 %v1901_v6 }
 0x2db   :  { %1538 = vmatpush3.bf16.msra.mxu1 %v1720_v1 }
 0x2dc   :  { %1539 = vmatprep.subr.bf16.mxu1 %v1901_v6 }
 0x2df   :  { %1540 = vmatpush3.bf16.msra.mxu1 %v1721_v45 }
 0x395   :  { %v919_v35 = vpop.f32.mrb[4].mxu1 }
 0x396   :  { %v920_v36 = vadd.f32 %v1404_v34, %v919_v35  ;;  %v1523_v37 = vpop.f32.mrb[5].mxu1 }
 0x397   :  { %v922_v38 = vpop.f32.mrb[6].mxu1 }
 0x398   :  { %v925_v39 = vmul.f32 %v920_v36, %v2058_v23  ;;  %v1524_v40 = vpop.f32.mrb[7].mxu1 }
 0x39a   :  { %v2117_v41 = vadd.f32 %v925_v39, %v2058_v23 }
 0x39c   :  { %v927_v42 = vpack.c.bf16 %v2117_v41, %v2117_v41 }
 0x39e   :  { %1058 = vmatmul.mubr.bf16.vlgmr.msra.gmra.mrb[12].mxu0 %v927_v42 }
 0x39f   :  { %1561 = vmatprep.mubr.msk.bf16.mxu0 %vm1902_vm0, %v1901_v6  ;;  %1546 = vmatpush3.bf16.msra.mxu0 %v1722_v52 }
 0x3a0   :  { %1547 = vmatprep.subr.bf16.mxu0 %v1901_v6 }
 0x3a3   :  { %1548 = vmatpush3.bf16.msra.mxu0 %v1723_v53 }
 0x3a4   :  { %1549 = vmatprep.subr.bf16.mxu0 %v1901_v6 }
 0x3a7   :  { %1550 = vmatpush3.bf16.msra.mxu0 %v1724_v54 }
 0x3a8   :  { %1551 = vmatprep.subr.bf16.mxu0 %v1901_v6 }
 0x3ab   :  { %1552 = vmatpush3.bf16.msra.mxu0 %v1725_v59 }
 0x3ac   :  { %1553 = vmatprep.subr.bf16.mxu0 %v1901_v6 }
 0x3af   :  { %1554 = vmatpush3.bf16.msra.mxu0 %v1726_v60 }
 0x3b0   :  { %1555 = vmatprep.subr.bf16.mxu0 %v1901_v6 }
 0x3b3   :  { %1556 = vmatpush3.bf16.msra.mxu0 %v1727_v61 }
 0x3b4   :  { %1557 = vmatprep.subr.bf16.mxu0 %v1901_v6 }
 0x3b7   :  { %1558 = vmatpush3.bf16.msra.mxu0 %v1728_v62 }
 0x3b8   :  { %1559 = vmatprep.subr.bf16.mxu0 %v1901_v6  ;;  %v1438_v6 = vld [vmem:[%s2154_s10 + $0x1] ss:$0 sm:$0xff] }
 0x3bb   :  { %1560 = vmatpush3.bf16.msra.mxu0 %v1729_v63 }
 0x471   :  { %v1059_v46 = vpop.f32.mrb[12].mxu0 }
 0x472   :  { %1067 = vmax.xlane.f32.xlu1 %v1059_v46  ;;  %v1061_v47 = vpop.f32.mrb[13].mxu0 }
 0x473   :  { %1738 = vtanh.f32 %v1061_v47  ;;  %v1063_v48 = vpop.f32.mrb[14].mxu0 }
 0x474   :  { %v1064_v49 = vpop.f32.mrb[15].mxu0 }
 0x47d   :  { %v1739_v50 = vpop.eup %1738 }
 0x47e   :  { %v1077_v51 = vpack.c.bf16 %v1739_v50, %v1739_v50 }
 0x480   :  { %1542 = vmatmul.mubr.bf16.vlgmr.msra.gmra.mrb[8].mxu1 %v1077_v51 }
 0x4ff   :  { %v1068_v55 = vpop.xlane.xlu1 %1067 }
 0x500   :  { %v1069_v56 = vsub.f32 %v1059_v46, %v1068_v55 }
 0x502   :  { %v1070_v57 = vmul.f32 1.442695, %v1069_v56 }
 0x504   :  { %1740 = vpow2.f32 %v1070_v57 }
 0x50e   :  { %v1741_v58 = vpop.eup %1740 }
 0x50f   :  { %1072 = vadd.xlane.f32.xlu1 %v1741_v58 }
 0x553   :  { %v1177_v0 = vpop.f32.mrb[8].mxu1 }
 0x554   :  { %v1543_v2 = vpop.f32.mrb[9].mxu1 }
 0x555   :  { %v1180_v3 = vpop.f32.mrb[10].mxu1 }
 0x556   :  { %v1544_v4 = vpop.f32.mrb[11].mxu1 }
 0x59c   :  { %v1073_v5 = vpop.xlane.xlu1 %1072 }
 0x59d   :  { %1742 = vrcp.f32 %v1073_v5 }
 0x59e   :  { %1744 = vtanh.f32 %v1177_v0 }
 0x5a7   :  { %v1743_v7 = vpop.eup %1742 }
 0x5a8   :  { %v1075_v8 = vmul.f32 32.0, %v1743_v7  ;;  %v1745_v10 = vpop.eup %1744 }
 0x5aa   :  { %v1076_v9 = vmul.f32 %v1741_v58, %v1075_v8 }
 0x5ac   :  { %v1184_v11 = vmul.f32 %v1745_v10, %v1076_v9 }
 0x5ae   :  { %v1185_v12 = vpack.c.bf16 %v1184_v11, %v1184_v11 }
 0x5b0   :  { %1562 = vmatmul.mubr.bf16.vlgmr.msra.gmra.mrb[16].mxu0 %v1185_v12 }
 0x683   :  { %v1293_v13 = vpop.f32.mrb[16].mxu0 }
 0x684   :  { %v1294_v14 = vadd.f32 %v1438_v6, %v1293_v13  ;;  %v1563_v15 = vpop.f32.mrb[17].mxu0 }
 0x685   :  { %v1296_v16 = vpop.f32.mrb[18].mxu0 }
 0x686   :  { %v1299_v17 = vmul.f32 %v1294_v14, %v2058_v23  ;;  %v1564_v18 = vpop.f32.mrb[19].mxu0 }
 0x688   :  { %v1300_v20 = vadd.f32 %v1299_v17, %v2117_v41 }
 0x68a   :  { %v1308_v21 = vmul.f32 %v1447_v19, %v1300_v20 }
 0x68c   :  { %1309 = vadd.xlane.f32.xlu1 %v1308_v21 }
 0x719   :  { %v1310_v27 = vpop.xlane.xlu1 %1309 }
 0x71a   :  { %v1311_v28 = vadd.f32 %v1310_v27, %v547_v26 }
 0x71c   :  { %v1312_v30 = vadd.f32 %v1311_v28, %v557_v29 }
 0x71e   :  { %v1448_v31 = vmul.f32 -1.442695, %v1312_v30 }
 0x720   :  { %1746 = vpow2.f32 %v1448_v31 }
 0x72a   :  { %v1747_v23 = vpop.eup %1746 }
 0x72b   :  { %v1316_v32 = vadd.f32 1.0, %v1747_v23 }
 0x72d   :  { %1748 = vrcp.f32 %v1316_v32 }
 0x737   :  { %v1749_v33 = vpop.eup %1748 }
 0x738   :  { %1320 = vst.msk [vmem:[%s2157_s13] sm:$0xff] %vm1319_vm1, %v1749_v33 }
 0x739   :  { %1325 = vsyncpa [#allocation4], 1 }
 0x73a   :  { %1326 = vsyncpa [#allocation6], 1 }
 0x73b   :  { %1327 = vsyncpa [#allocation9], 1 }
 0x73c   :  { %1328 = vsyncpa [#allocation12], 1 }

</bundles_post_ra>
